<compile_context>
chip_gen: v7x
topology: tpu7x:2x2x1
jax: 0.10.0
libtpu: 0.0.40
codegen_flags: <defaults>
</compile_context>

<pallas_src>
import math

import jax
import jax.numpy as jnp
from jax.experimental import pallas as pl
from jax.experimental.pallas import tpu as pltpu


# ----------------------------------------------------------------------------
# Pallas kernel: conditioned denoiser core (one batch element, one T tile)
#   h_u = tok @ W_in + temb                      (unconditioned hidden)
#   h_c = h_u + gemb                             (+ global conditioning)
#   h_c += CrossAttn(h_c, ctx, mask) @ W_o
#   out_cond   = W_out_ct . h_c  -> (C8, Tt)     (time-major, lane-dense in T)
#   out_uncond = W_out_ct . h_u  -> (C8, Tt)     (attn contribution is exactly 0
#                                                 for null conditioning, so this
#                                                 equals the null-cond forward)
# ----------------------------------------------------------------------------
def _denoiser_kernel(tok_ref, tb_ref, gb_ref, ctx_ref, mb_ref,
                     w_in_ref, w_q_ref, w_k_ref, w_v_ref, w_o_ref, w_out_ref,
                     out_c_ref, out_u_ref):
    f32 = jnp.float32
    bf16 = jnp.bfloat16

    _, Tt, Cin = tok_ref.shape
    _, S, D = ctx_ref.shape
    H = w_q_ref.shape[0]
    C8 = w_out_ref.shape[0]

    tok = tok_ref[...]                     # (1, Tt, Cin) bf16
    temb = tb_ref[...]                     # (1, 1, H)    f32  timestep-MLP bias
    gemb = gb_ref[...]                     # (1, 1, H)    f32  global-cond bias
    ctx = ctx_ref[...]                     # (1, S, D)    bf16 [cross_attn ; prepend]
    mbias = mb_ref[...]                    # (1, 1, S)    f32  additive mask (0 / -1e9)

    # input projection (x concat input_concat_cond), shared by both CFG branches
    proj = jnp.dot(tok.reshape(Tt, Cin), w_in_ref[...],
                   preferred_element_type=f32).reshape(1, Tt, H)
    h_u = proj + temb                      # unconditioned hidden (temb only)
    h_c = h_u + gemb                       # + global conditioning
    h_c_bf = h_c.astype(bf16)              # single canonical bf16 copy

    # --- single-head cross attention (1/sqrt(H) pre-folded into W_q) ---
    q = jnp.dot(h_c_bf.reshape(Tt, H), w_q_ref[...],
                preferred_element_type=f32).reshape(1, Tt, H)
    k = jnp.dot(ctx.reshape(S, D), w_k_ref[...],
                preferred_element_type=f32).reshape(1, S, H)
    v = jnp.dot(ctx.reshape(S, D), w_v_ref[...],
                preferred_element_type=f32).reshape(1, S, H)

    scores = jnp.einsum('bth,bsh->bts', q.astype(bf16), k.astype(bf16),
                        preferred_element_type=f32) + mbias               # (1,Tt,S)
    scores = scores - jnp.max(scores, axis=-1, keepdims=True)
    p = jnp.exp(scores)
    p = p * pl.reciprocal(jnp.sum(p, axis=-1, keepdims=True), approx=True)  # softmax f32

    attn = jnp.einsum('bts,bsh->bth', p.astype(bf16), v.astype(bf16),
                      preferred_element_type=f32)                          # (1,Tt,H)
    h_out = h_c + jnp.dot(attn.reshape(Tt, H).astype(bf16), w_o_ref[...],
                          preferred_element_type=f32).reshape(1, Tt, H)

    # time-major output projection: (1,C8,H) x (1,Tt,H) -> (1,C8,Tt), lane-dense in T
    w_out_b = w_out_ref[...].reshape(1, C8, H)
    out_c = jnp.einsum('bch,bth->bct', w_out_b, h_out.astype(bf16),
                       preferred_element_type=f32)
    out_u = jnp.einsum('bch,bth->bct', w_out_b, h_u.astype(bf16),
                       preferred_element_type=f32)
    out_c_ref[...] = out_c.astype(out_c_ref.dtype)
    out_u_ref[...] = out_u.astype(out_u_ref.dtype)


def _run_denoiser(params, tok, temb, gemb, ctx, mask):
    B, T, Cin = tok.shape
    _, S, D = ctx.shape
    d = params["dims"]
    H, C8 = d["H"], d["C8"]

    # T tile: whole T when small; 512-token blocks otherwise so (Tt,H)/(Tt,S)
    # intermediates fit comfortably inside scoped VMEM even on v7x (64 MiB).
    # TODO(synk): per-generation tile sweep (v6e/v5e can take Tt=1024-2048) and
    # pipeline_mode=pl.Buffered(1) on the constant-index weight specs once
    # production H makes double-buffered resident weights a VMEM cost.
    Tt = T if T <= 512 else 512
    nt = pl.cdiv(T, Tt)
    grid = (B, nt)

    bf16 = jnp.bfloat16
    f32 = jnp.float32
    tok_b = tok.astype(bf16)
    ctx_b = ctx.astype(bf16)
    temb3 = temb.reshape(B, 1, H).astype(f32)
    gemb3 = gemb.reshape(B, 1, H).astype(f32)
    mbias3 = ((mask - 1.0) * 1e9).reshape(B, 1, S).astype(f32)   # 0 keep / -1e9 drop

    scale = 1.0 / math.sqrt(H)
    weights = [
        params["w_in"].astype(bf16),
        (params["w_q"] * scale).astype(bf16),      # QK^T scale folded into W_q
        params["w_k"].astype(bf16),
        params["w_v"].astype(bf16),
        params["w_o"].astype(bf16),
        params["w_out_ct"].astype(bf16),           # (C8, H), zero rows past C
    ]
    w_specs = [pl.BlockSpec(w.shape, lambda b, t: (0, 0)) for w in weights]

    # Advisory cost estimate (whole call) so XLA schedules neighboring ops well.
    flops_step = 2 * (Tt * Cin * H + 2 * Tt * H * H + 2 * S * D * H
                      + 2 * Tt * S * H + 2 * Tt * H * C8)
    bytes_step = (2 * (Tt * Cin + S * D + sum(int(w.size) for w in weights))
                  + 4 * (2 * H + S) + 4 * 2 * C8 * Tt)
    cost = pl.CostEstimate(flops=int(flops_step * B * nt),
                           transcendentals=int(Tt * (S + 1) * B * nt),
                           bytes_accessed=int(bytes_step * B * nt))

    out_c, out_u = pl.pallas_call(
        _denoiser_kernel,
        out_shape=(jax.ShapeDtypeStruct((B, C8, T), f32),
                   jax.ShapeDtypeStruct((B, C8, T), f32)),
        grid=grid,
        in_specs=[
            pl.BlockSpec((1, Tt, Cin), lambda b, t: (b, t, 0)),
            pl.BlockSpec((1, 1, H), lambda b, t: (b, 0, 0)),
            pl.BlockSpec((1, 1, H), lambda b, t: (b, 0, 0)),
            pl.BlockSpec((1, S, D), lambda b, t: (b, 0, 0)),
            pl.BlockSpec((1, 1, S), lambda b, t: (b, 0, 0)),
        ] + w_specs,
        out_specs=(pl.BlockSpec((1, C8, Tt), lambda b, t: (b, 0, t)),
                   pl.BlockSpec((1, C8, Tt), lambda b, t: (b, 0, t))),
        compiler_params=pltpu.CompilerParams(
            dimension_semantics=("parallel", "parallel"),
            vmem_limit_bytes=48 * 1024 * 1024),
        cost_estimate=cost,
    )(tok_b, temb3, gemb3, ctx_b, mbias3, *weights)
    return out_c, out_u


# ----------------------------------------------------------------------------
# Plain-JAX glue: parameter init, timestep features, conditioning assembly, CFG
# ----------------------------------------------------------------------------
def init_params(key, *, io_channels=4, concat_channels=4, cond_dim=32,
                global_dim=16, t_feat_dim=32, hidden=32, cross_seq=8,
                prepend_len=4):
    ks = jax.random.split(key, 9)

    def w(k, shape):
        return jax.random.normal(k, shape, jnp.float32) * 0.02

    cin = io_channels + concat_channels
    c8 = ((io_channels + 7) // 8) * 8           # time-major pad: C -> sublane multiple of 8

    w_out = w(ks[8], (hidden, io_channels))
    # time-major output projection weight (C8, H); pad rows are exactly zero so the
    # padded output channels are zero (sliced off in the wrapper).
    w_out_ct = jnp.zeros((c8, hidden), jnp.float32).at[:io_channels, :].set(w_out.T)

    # TODO(synk): production dims should use H, D multiples of 128 (256 on v6e/v7x)
    # so the MXU K/N dims are not mostly padding; demo shapes kept tiny here.
    return {
        "w_in": w(ks[0], (cin, hidden)),
        "w_t1": w(ks[1], (t_feat_dim, hidden)),
        "w_t2": w(ks[2], (hidden, hidden)),
        "w_g": w(ks[3], (global_dim, hidden)),
        "w_q": w(ks[4], (hidden, hidden)),
        "w_k": w(ks[5], (cond_dim, hidden)),
        "w_v": w(ks[6], (cond_dim, hidden)),
        "w_o": w(ks[7], (hidden, hidden)),
        "w_out_ct": w_out_ct,
        "dims": dict(Cc=concat_channels, D=cond_dim, G=global_dim,
                     F=t_feat_dim, S=cross_seq, P=prepend_len,
                     C=io_channels, C8=c8, H=hidden),
    }


def timestep_features(t, feat_dim):
    half = feat_dim // 2
    freqs = jnp.exp(-math.log(10000.0) * jnp.arange(half, dtype=jnp.float32) / half)
    args = t.astype(jnp.float32)[:, None] * freqs[None, :]
    return jnp.concatenate([jnp.sin(args), jnp.cos(args)], axis=-1)


def conditioned_diffusion_forward(params, x, t,
                                  cross_attn_cond=None, cross_attn_mask=None,
                                  input_concat_cond=None, global_embed=None,
                                  prepend_cond=None, prepend_cond_mask=None,
                                  cfg_scale=1.0, cfg_dropout_prob=0.0,
                                  batch_cfg=False, rescale_cfg=False,
                                  rng=None):
    B, C, T = x.shape
    d = params["dims"]
    Cc, D, G, F, S, P = d["Cc"], d["D"], d["G"], d["F"], d["S"], d["P"]

    tok = jnp.transpose(x, (0, 2, 1))                                     # (B, T, C)
    icc = jnp.zeros((B, Cc, T), jnp.float32) if input_concat_cond is None else input_concat_cond
    tok = jnp.concatenate([tok, jnp.transpose(icc, (0, 2, 1))], axis=-1)  # (B, T, C+Cc)

    # timestep MLP + global projection hoisted out of the kernel (batched XLA matmuls)
    tfeat = timestep_features(t, F)                                       # (B, F)
    temb = jnp.dot(tfeat, params["w_t1"])
    temb = temb * jax.nn.sigmoid(temb)
    temb = jnp.dot(temb, params["w_t2"])                                  # (B, H)
    gcond = jnp.zeros((B, G), jnp.float32) if global_embed is None else global_embed

    if cross_attn_cond is None:
        ca = jnp.zeros((B, S, D), jnp.float32)
        ca_mask = jnp.zeros((B, S), jnp.float32)
    else:
        ca = cross_attn_cond
        ca_mask = (jnp.ones((B, S), jnp.float32) if cross_attn_mask is None
                   else cross_attn_mask.astype(jnp.float32))

    if prepend_cond is None:
        pc = jnp.zeros((B, P, D), jnp.float32)
        pc_mask = jnp.zeros((B, P), jnp.float32)
    else:
        pc = prepend_cond
        pc_mask = (jnp.ones((B, P), jnp.float32) if prepend_cond_mask is None
                   else prepend_cond_mask.astype(jnp.float32))

    ctx = jnp.concatenate([ca, pc], axis=1)                               # (B, S+P, D)
    mask = jnp.concatenate([ca_mask, pc_mask], axis=1)                    # (B, S+P)

    # training-time conditioning dropout for CFG (null conditioning = zero values,
    # mask left as-is -> attends uniformly over zeroed keys/values, no NaNs)
    if cfg_dropout_prob > 0.0:
        key = rng if rng is not None else jax.random.PRNGKey(0)
        drop = jax.random.bernoulli(key, cfg_dropout_prob, (B, 1, 1)).astype(jnp.float32)
        ctx = ctx * (1.0 - drop)
        gcond = gcond * (1.0 - drop[:, :, 0])

    gemb = jnp.dot(gcond, params["w_g"])                                  # (B, H)

    # Single conditioned pass.  Because null conditioning zeroes keys/values, the
    # attention contribution of the unconditioned branch is exactly zero, so the
    # kernel's second output (tok@W_in + temb)@W_out equals the null-cond forward.
    # batch_cfg only ever controlled whether the two branches were batched in one
    # call — numerically identical here, so the flag is accepted and ignored.
    out_c8, out_u8 = _run_denoiser(params, tok, temb, gemb, ctx, mask)
    cond_out = out_c8[:, :C, :]                 # drop C->8 pad; already (B, C, T) = NCT

    if cfg_scale != 1.0:
        uncond_out = out_u8[:, :C, :]
        cfg_out = uncond_out + (cond_out - uncond_out) * cfg_scale
        if rescale_cfg:
            out_std = jnp.std(cond_out, axis=(1, 2), keepdims=True)
            cfg_std = jnp.std(cfg_out, axis=(1, 2), keepdims=True)
            cfg_out = cfg_out * (out_std / (cfg_std + 1e-8))
        return cfg_out
    return cond_out


if __name__ == "__main__":
    key = jax.random.PRNGKey(0)
    pk, xk, tk, ck, gk, ppk, ik = jax.random.split(key, 7)

    B, C, T = 2, 4, 16
    params = init_params(pk, io_channels=C)
    d = params["dims"]

    x = jax.random.normal(xk, (B, C, T), jnp.float32)
    t = jax.random.uniform(tk, (B,), jnp.float32)
    cross = jax.random.normal(ck, (B, d["S"], d["D"]), jnp.float32)
    cross_mask = jnp.ones((B, d["S"]), jnp.float32)
    ic = jax.random.normal(ik, (B, d["Cc"], T), jnp.float32)
    ge = jax.random.normal(gk, (B, d["G"]), jnp.float32)
    pc = jax.random.normal(ppk, (B, d["P"], d["D"]), jnp.float32)
    pc_mask = jnp.ones((B, d["P"]), jnp.float32)

    out = conditioned_diffusion_forward(
        params, x, t,
        cross_attn_cond=cross, cross_attn_mask=cross_mask,
        input_concat_cond=ic, global_embed=ge,
        prepend_cond=pc, prepend_cond_mask=pc_mask,
        cfg_scale=3.0, cfg_dropout_prob=0.0,
        batch_cfg=True, rescale_cfg=True)
    out = jax.block_until_ready(out)
    assert out.shape == (B, C, T) and out.dtype == jnp.float32
    print("KERNEL_OK")
</pallas_src>

<mosaic_0001>
module attributes {stable_mosaic.version = 11 : i64} {
  func.func @_denoiser_kernel(%arg0: i32, %arg1: i32, %arg2: memref<1x16x8xbf16, #tpu.memory_space<vmem>>, %arg3: memref<1x1x32xf32, #tpu.memory_space<vmem>>, %arg4: memref<1x1x32xf32, #tpu.memory_space<vmem>>, %arg5: memref<1x12x32xbf16, #tpu.memory_space<vmem>>, %arg6: memref<1x1x12xf32, #tpu.memory_space<vmem>>, %arg7: memref<8x32xbf16, #tpu.memory_space<vmem>>, %arg8: memref<32x32xbf16, #tpu.memory_space<vmem>>, %arg9: memref<32x32xbf16, #tpu.memory_space<vmem>>, %arg10: memref<32x32xbf16, #tpu.memory_space<vmem>>, %arg11: memref<32x32xbf16, #tpu.memory_space<vmem>>, %arg12: memref<8x32xbf16, #tpu.memory_space<vmem>>, %arg13: memref<1x8x16xf32, #tpu.memory_space<vmem>>, %arg14: memref<1x8x16xf32, #tpu.memory_space<vmem>>) attributes {dimension_semantics = [#tpu.dimension_semantics<parallel>, #tpu.dimension_semantics<parallel>], iteration_bounds = array<i64: 2, 1>, scalar_prefetch = 0 : i64, scratch_operands = 0 : i64, tpu.core_type = #tpu.core_type<tc>, window_params = [{transform_indices = @transform_0, window_bounds = array<i64: 1, 16, 8>}, {transform_indices = @transform_1, window_bounds = array<i64: 1, 1, 32>}, {transform_indices = @transform_2, window_bounds = array<i64: 1, 1, 32>}, {transform_indices = @transform_3, window_bounds = array<i64: 1, 12, 32>}, {transform_indices = @transform_4, window_bounds = array<i64: 1, 1, 12>}, {pipeline_mode = #tpu.pipeline_mode<synchronous>, transform_indices = @transform_5, window_bounds = array<i64: 8, 32>}, {pipeline_mode = #tpu.pipeline_mode<synchronous>, transform_indices = @transform_6, window_bounds = array<i64: 32, 32>}, {pipeline_mode = #tpu.pipeline_mode<synchronous>, transform_indices = @transform_7, window_bounds = array<i64: 32, 32>}, {pipeline_mode = #tpu.pipeline_mode<synchronous>, transform_indices = @transform_8, window_bounds = array<i64: 32, 32>}, {pipeline_mode = #tpu.pipeline_mode<synchronous>, transform_indices = @transform_9, window_bounds = array<i64: 32, 32>}, {pipeline_mode = #tpu.pipeline_mode<synchronous>, transform_indices = @transform_10, window_bounds = array<i64: 8, 32>}, {transform_indices = @transform_11, window_bounds = array<i64: 1, 8, 16>}, {transform_indices = @transform_12, window_bounds = array<i64: 1, 8, 16>}]} {
    %c0 = arith.constant 0 : index
    %c0_0 = arith.constant 0 : index
    %c0_1 = arith.constant 0 : index
    %0 = vector.load %arg2[%c0, %c0_0, %c0_1] : memref<1x16x8xbf16, #tpu.memory_space<vmem>>, vector<1x16x8xbf16>
    %c0_2 = arith.constant 0 : index
    %c0_3 = arith.constant 0 : index
    %c0_4 = arith.constant 0 : index
    %1 = vector.load %arg3[%c0_2, %c0_3, %c0_4] : memref<1x1x32xf32, #tpu.memory_space<vmem>>, vector<1x1x32xf32>
    %c0_5 = arith.constant 0 : index
    %c0_6 = arith.constant 0 : index
    %c0_7 = arith.constant 0 : index
    %2 = vector.load %arg4[%c0_5, %c0_6, %c0_7] : memref<1x1x32xf32, #tpu.memory_space<vmem>>, vector<1x1x32xf32>
    %c0_8 = arith.constant 0 : index
    %c0_9 = arith.constant 0 : index
    %c0_10 = arith.constant 0 : index
    %3 = vector.load %arg5[%c0_8, %c0_9, %c0_10] : memref<1x12x32xbf16, #tpu.memory_space<vmem>>, vector<1x12x32xbf16>
    %c0_11 = arith.constant 0 : index
    %c0_12 = arith.constant 0 : index
    %c0_13 = arith.constant 0 : index
    %4 = vector.load %arg6[%c0_11, %c0_12, %c0_13] : memref<1x1x12xf32, #tpu.memory_space<vmem>>, vector<1x1x12xf32>
    %5 = vector.shape_cast %0 : vector<1x16x8xbf16> to vector<16x8xbf16>
    %c0_14 = arith.constant 0 : index
    %c0_15 = arith.constant 0 : index
    %6 = vector.load %arg7[%c0_14, %c0_15] : memref<8x32xbf16, #tpu.memory_space<vmem>>, vector<8x32xbf16>
    %cst = arith.constant dense<0.000000e+00> : vector<16x32xf32>
    %7 = tpu.matmul %5, %6, %cst {dimension_numbers = #tpu.dot_dimension_numbers<[1], [0], [0], [1], [0, 0, 1, 1], [], []>} : vector<16x8xbf16>, vector<8x32xbf16>, vector<16x32xf32> -> vector<16x32xf32>
    %8 = vector.shape_cast %7 : vector<16x32xf32> to vector<1x16x32xf32>
    %9 = vector.broadcast %1 : vector<1x1x32xf32> to vector<1x16x32xf32>
    %10 = arith.addf %8, %9 : vector<1x16x32xf32>
    %11 = vector.broadcast %2 : vector<1x1x32xf32> to vector<1x16x32xf32>
    %12 = arith.addf %10, %11 : vector<1x16x32xf32>
    %13 = arith.truncf %12 : vector<1x16x32xf32> to vector<1x16x32xbf16>
    %14 = vector.shape_cast %13 : vector<1x16x32xbf16> to vector<16x32xbf16>
    %c0_16 = arith.constant 0 : index
    %c0_17 = arith.constant 0 : index
    %15 = vector.load %arg8[%c0_16, %c0_17] : memref<32x32xbf16, #tpu.memory_space<vmem>>, vector<32x32xbf16>
    %cst_18 = arith.constant dense<0.000000e+00> : vector<16x32xf32>
    %16 = tpu.matmul %14, %15, %cst_18 {dimension_numbers = #tpu.dot_dimension_numbers<[1], [0], [0], [1], [0, 0, 1, 1], [], []>} : vector<16x32xbf16>, vector<32x32xbf16>, vector<16x32xf32> -> vector<16x32xf32>
    %17 = vector.shape_cast %16 : vector<16x32xf32> to vector<1x16x32xf32>
    %18 = vector.shape_cast %3 : vector<1x12x32xbf16> to vector<12x32xbf16>
    %c0_19 = arith.constant 0 : index
    %c0_20 = arith.constant 0 : index
    %19 = vector.load %arg9[%c0_19, %c0_20] : memref<32x32xbf16, #tpu.memory_space<vmem>>, vector<32x32xbf16>
    %cst_21 = arith.constant dense<0.000000e+00> : vector<12x32xf32>
    %20 = tpu.matmul %18, %19, %cst_21 {dimension_numbers = #tpu.dot_dimension_numbers<[1], [0], [0], [1], [0, 0, 1, 1], [], []>} : vector<12x32xbf16>, vector<32x32xbf16>, vector<12x32xf32> -> vector<12x32xf32>
    %21 = vector.shape_cast %20 : vector<12x32xf32> to vector<1x12x32xf32>
    %22 = vector.shape_cast %3 : vector<1x12x32xbf16> to vector<12x32xbf16>
    %c0_22 = arith.constant 0 : index
    %c0_23 = arith.constant 0 : index
    %23 = vector.load %arg10[%c0_22, %c0_23] : memref<32x32xbf16, #tpu.memory_space<vmem>>, vector<32x32xbf16>
    %cst_24 = arith.constant dense<0.000000e+00> : vector<12x32xf32>
    %24 = tpu.matmul %22, %23, %cst_24 {dimension_numbers = #tpu.dot_dimension_numbers<[1], [0], [0], [1], [0, 0, 1, 1], [], []>} : vector<12x32xbf16>, vector<32x32xbf16>, vector<12x32xf32> -> vector<12x32xf32>
    %25 = vector.shape_cast %24 : vector<12x32xf32> to vector<1x12x32xf32>
    %26 = arith.truncf %17 : vector<1x16x32xf32> to vector<1x16x32xbf16>
    %27 = arith.truncf %21 : vector<1x12x32xf32> to vector<1x12x32xbf16>
    "tpu.trace_start"() <{level = 10 : i32, message = "bth,bsh->bts"}> : () -> ()
    %cst_25 = arith.constant dense<0.000000e+00> : vector<1x16x12xf32>
    %28 = tpu.matmul %26, %27, %cst_25 {dimension_numbers = #tpu.dot_dimension_numbers<[2], [2], [1], [1], [0, 0, 0, 1, 1, 1], [0], [0]>} : vector<1x16x32xbf16>, vector<1x12x32xbf16>, vector<1x16x12xf32> -> vector<1x16x12xf32>
    "tpu.trace_stop"() : () -> ()
    %29 = vector.broadcast %4 : vector<1x1x12xf32> to vector<1x16x12xf32>
    %30 = arith.addf %28, %29 : vector<1x16x12xf32>
    %cst_26 = arith.constant dense<0xFF800000> : vector<1x16xf32>
    %31 = vector.multi_reduction <maximumf>, %30, %cst_26 [2] : vector<1x16x12xf32> to vector<1x16xf32>
    %32 = vector.shape_cast %31 : vector<1x16xf32> to vector<1x16x1xf32>
    %33 = vector.broadcast %32 : vector<1x16x1xf32> to vector<1x16x12xf32>
    %34 = arith.subf %30, %33 : vector<1x16x12xf32>
    %35 = math.exp %34 : vector<1x16x12xf32>
    %cst_27 = arith.constant dense<0.000000e+00> : vector<1x16xf32>
    %36 = vector.multi_reduction <add>, %35, %cst_27 [2] : vector<1x16x12xf32> to vector<1x16xf32>
    %37 = vector.shape_cast %36 : vector<1x16xf32> to vector<1x16x1xf32>
    %38 = tpu.reciprocal %37 {approx = true} : vector<1x16x1xf32> -> vector<1x16x1xf32>
    %39 = vector.broadcast %38 : vector<1x16x1xf32> to vector<1x16x12xf32>
    %40 = arith.mulf %35, %39 : vector<1x16x12xf32>
    %41 = arith.truncf %40 : vector<1x16x12xf32> to vector<1x16x12xbf16>
    %42 = arith.truncf %25 : vector<1x12x32xf32> to vector<1x12x32xbf16>
    "tpu.trace_start"() <{level = 10 : i32, message = "bts,bsh->bth"}> : () -> ()
    %cst_28 = arith.constant dense<0.000000e+00> : vector<1x16x32xf32>
    %43 = tpu.matmul %41, %42, %cst_28 {dimension_numbers = #tpu.dot_dimension_numbers<[2], [1], [1], [2], [0, 0, 0, 1, 1, 2], [0], [0]>} : vector<1x16x12xbf16>, vector<1x12x32xbf16>, vector<1x16x32xf32> -> vector<1x16x32xf32>
    "tpu.trace_stop"() : () -> ()
    %44 = vector.shape_cast %43 : vector<1x16x32xf32> to vector<16x32xf32>
    %45 = arith.truncf %44 : vector<16x32xf32> to vector<16x32xbf16>
    %c0_29 = arith.constant 0 : index
    %c0_30 = arith.constant 0 : index
    %46 = vector.load %arg11[%c0_29, %c0_30] : memref<32x32xbf16, #tpu.memory_space<vmem>>, vector<32x32xbf16>
    %cst_31 = arith.constant dense<0.000000e+00> : vector<16x32xf32>
    %47 = tpu.matmul %45, %46, %cst_31 {dimension_numbers = #tpu.dot_dimension_numbers<[1], [0], [0], [1], [0, 0, 1, 1], [], []>} : vector<16x32xbf16>, vector<32x32xbf16>, vector<16x32xf32> -> vector<16x32xf32>
    %48 = vector.shape_cast %47 : vector<16x32xf32> to vector<1x16x32xf32>
    %49 = arith.addf %12, %48 : vector<1x16x32xf32>
    %c0_32 = arith.constant 0 : index
    %c0_33 = arith.constant 0 : index
    %50 = vector.load %arg12[%c0_32, %c0_33] : memref<8x32xbf16, #tpu.memory_space<vmem>>, vector<8x32xbf16>
    %51 = vector.shape_cast %50 : vector<8x32xbf16> to vector<1x8x32xbf16>
    %52 = arith.truncf %49 : vector<1x16x32xf32> to vector<1x16x32xbf16>
    "tpu.trace_start"() <{level = 10 : i32, message = "bch,bth->bct"}> : () -> ()
    %cst_34 = arith.constant dense<0.000000e+00> : vector<1x8x16xf32>
    %53 = tpu.matmul %51, %52, %cst_34 {dimension_numbers = #tpu.dot_dimension_numbers<[2], [2], [1], [1], [0, 0, 0, 1, 1, 1], [0], [0]>} : vector<1x8x32xbf16>, vector<1x16x32xbf16>, vector<1x8x16xf32> -> vector<1x8x16xf32>
    "tpu.trace_stop"() : () -> ()
    %54 = arith.truncf %10 : vector<1x16x32xf32> to vector<1x16x32xbf16>
    "tpu.trace_start"() <{level = 10 : i32, message = "bch,bth->bct"}> : () -> ()
    %cst_35 = arith.constant dense<0.000000e+00> : vector<1x8x16xf32>
    %55 = tpu.matmul %51, %54, %cst_35 {dimension_numbers = #tpu.dot_dimension_numbers<[2], [2], [1], [1], [0, 0, 0, 1, 1, 1], [0], [0]>} : vector<1x8x32xbf16>, vector<1x16x32xbf16>, vector<1x8x16xf32> -> vector<1x8x16xf32>
    "tpu.trace_stop"() : () -> ()
    %c0_36 = arith.constant 0 : index
    %c0_37 = arith.constant 0 : index
    %c0_38 = arith.constant 0 : index
    %56 = vector.load %arg13[%c0_36, %c0_37, %c0_38] : memref<1x8x16xf32, #tpu.memory_space<vmem>>, vector<1x8x16xf32>
    tpu.vector_store %arg13[%c0_36, %c0_37, %c0_38], %53 {strides = array<i32>} : memref<1x8x16xf32, #tpu.memory_space<vmem>>, vector<1x8x16xf32>,
    %c0_39 = arith.constant 0 : index
    %c0_40 = arith.constant 0 : index
    %c0_41 = arith.constant 0 : index
    %57 = vector.load %arg14[%c0_39, %c0_40, %c0_41] : memref<1x8x16xf32, #tpu.memory_space<vmem>>, vector<1x8x16xf32>
    tpu.vector_store %arg14[%c0_39, %c0_40, %c0_41], %55 {strides = array<i32>} : memref<1x8x16xf32, #tpu.memory_space<vmem>>, vector<1x8x16xf32>,
    return
  }
  func.func @transform_0(%arg0: i32, %arg1: i32) -> (i32, i32, i32) {
    %c0_i32 = arith.constant 0 : i32
    %c0_i32_0 = arith.constant 0 : i32
    return %arg0, %arg1, %c0_i32 : i32, i32, i32
  }
  func.func @transform_1(%arg0: i32, %arg1: i32) -> (i32, i32, i32) {
    %c0_i32 = arith.constant 0 : i32
    %c0_i32_0 = arith.constant 0 : i32
    %c0_i32_1 = arith.constant 0 : i32
    return %arg0, %c0_i32, %c0_i32_0 : i32, i32, i32
  }
  func.func @transform_2(%arg0: i32, %arg1: i32) -> (i32, i32, i32) {
    %c0_i32 = arith.constant 0 : i32
    %c0_i32_0 = arith.constant 0 : i32
    %c0_i32_1 = arith.constant 0 : i32
    return %arg0, %c0_i32, %c0_i32_0 : i32, i32, i32
  }
  func.func @transform_3(%arg0: i32, %arg1: i32) -> (i32, i32, i32) {
    %c0_i32 = arith.constant 0 : i32
    %c0_i32_0 = arith.constant 0 : i32
    %c0_i32_1 = arith.constant 0 : i32
    return %arg0, %c0_i32, %c0_i32_0 : i32, i32, i32
  }
  func.func @transform_4(%arg0: i32, %arg1: i32) -> (i32, i32, i32) {
    %c0_i32 = arith.constant 0 : i32
    %c0_i32_0 = arith.constant 0 : i32
    %c0_i32_1 = arith.constant 0 : i32
    return %arg0, %c0_i32, %c0_i32_0 : i32, i32, i32
  }
  func.func @transform_5(%arg0: i32, %arg1: i32) -> (i32, i32) {
    %c0_i32 = arith.constant 0 : i32
    %c0_i32_0 = arith.constant 0 : i32
    %c0_i32_1 = arith.constant 0 : i32
    return %c0_i32, %c0_i32_0 : i32, i32
  }
  func.func @transform_6(%arg0: i32, %arg1: i32) -> (i32, i32) {
    %c0_i32 = arith.constant 0 : i32
    %c0_i32_0 = arith.constant 0 : i32
    %c0_i32_1 = arith.constant 0 : i32
    return %c0_i32, %c0_i32_0 : i32, i32
  }
  func.func @transform_7(%arg0: i32, %arg1: i32) -> (i32, i32) {
    %c0_i32 = arith.constant 0 : i32
    %c0_i32_0 = arith.constant 0 : i32
    %c0_i32_1 = arith.constant 0 : i32
    return %c0_i32, %c0_i32_0 : i32, i32
  }
  func.func @transform_8(%arg0: i32, %arg1: i32) -> (i32, i32) {
    %c0_i32 = arith.constant 0 : i32
    %c0_i32_0 = arith.constant 0 : i32
    %c0_i32_1 = arith.constant 0 : i32
    return %c0_i32, %c0_i32_0 : i32, i32
  }
  func.func @transform_9(%arg0: i32, %arg1: i32) -> (i32, i32) {
    %c0_i32 = arith.constant 0 : i32
    %c0_i32_0 = arith.constant 0 : i32
    %c0_i32_1 = arith.constant 0 : i32
    return %c0_i32, %c0_i32_0 : i32, i32
  }
  func.func @transform_10(%arg0: i32, %arg1: i32) -> (i32, i32) {
    %c0_i32 = arith.constant 0 : i32
    %c0_i32_0 = arith.constant 0 : i32
    %c0_i32_1 = arith.constant 0 : i32
    return %c0_i32, %c0_i32_0 : i32, i32
  }
  func.func @transform_11(%arg0: i32, %arg1: i32) -> (i32, i32, i32) {
    %c0_i32 = arith.constant 0 : i32
    %c0_i32_0 = arith.constant 0 : i32
    return %arg0, %c0_i32, %arg1 : i32, i32, i32
  }
  func.func @transform_12(%arg0: i32, %arg1: i32) -> (i32, i32, i32) {
    %c0_i32 = arith.constant 0 : i32
    %c0_i32_0 = arith.constant 0 : i32
    return %arg0, %c0_i32, %arg1 : i32, i32, i32
  }
}

</mosaic_0001>

<bundles_post_ra>
// kernel: tpu_custom_call.1
= control target key start
LH: loop header
LB: loop body
LE: loop exit
PB: predicated region body
PF: predicated region fallthrough
CT: control target
= control target key end

     0   :  { %s2144_s0 = inlined_call_operand.vmem [shape: bf16[2,16,8], index: 0, kind: input, shape index: {}]   ;;  %s2145_s1 = inlined_call_operand.vmem [shape: f32[2,1,32], index: 1, kind: input, shape index: {}]   ;;  %s2146_s2 = inlined_call_operand.hbm [shape: f32[2,1,32], index: 2, kind: input, shape index: {}]   ;;  %s2147_s3 = inlined_call_operand.vmem [shape: bf16[2,12,32], index: 3, kind: input, shape index: {}]   ;;  %s2148_s4 = inlined_call_operand.hbm [shape: f32[2,1,12], index: 4, kind: input, shape index: {}]   ;;  %s2149_s5 = inlined_call_operand.vmem [shape: bf16[8,32], index: 5, kind: input, shape index: {}]   ;;  %s2150_s6 = inlined_call_operand.vmem [shape: bf16[32,32], index: 6, kind: input, shape index: {}]   ;;  %s2151_s7 = inlined_call_operand.vmem [shape: bf16[32,32], index: 7, kind: input, shape index: {}]   ;;  %s2152_s8 = inlined_call_operand.vmem [shape: bf16[32,32], index: 8, kind: input, shape index: {}]   ;;  %s2153_s9 = inlined_call_operand.vmem [shape: bf16[32,32], index: 9, kind: input, shape index: {}]   ;;  %s2154_s10 = inlined_call_operand.vmem [shape: bf16[8,32], index: 10, kind: input, shape index: {}]   ;;  %s2155_s11 = inlined_call_operand.hbm [shape: f32[2,8,16], index: 11, kind: output, shape index: {0}]   ;;  %s2156_s12 = inlined_call_operand.hbm [shape: f32[2,8,16], index: 12, kind: output, shape index: {1}]  }
   0x1   :  { %2164 = sst [smem:[#allocation19_spill]] %s2146_s2 }
   0x2   :  { %18 = vsyncpa [#allocation3], 0 }
   0x3   :  { %20 = vsyncpa [#allocation3 + $0x1], 0 }
   0x4   :  { %21 = vsyncpa [#allocation6], 0 }
   0x5   :  { %23 = vsyncpa [#allocation6 + $0x1], 0 }
   0x6   :  { %24 = vsyncpa [#allocation4], 0 }
   0x7   :  { %26 = vsyncpa [#allocation4 + $0x1], 0 }
   0x8   :  { %27 = vsyncpa [#allocation9], 0 }
   0x9   :  { %29 = vsyncpa [#allocation9 + $0x1], 0  ;;  %s1778_s21 = smov 0   ;;  %s1780_s22 = smov 0  }
   0xa   :  { %s1782_s23 = smov 0   ;;  %s1784_s24 = smov 0  }
   0xb   :  { %s1786_s25 = smov 0   ;;  %s1788_s26 = smov 0  }
   0xc LB: > { %2165 = sst [smem:[#allocation14_spill]] %s1685_s21  ;;  %s1308_s27 = sadd.s32 4294967295, %s1705_s26   ;;  %s1705_s26 = sphi %s1788_s26, %s35_s26   ;;  %s1701_s25 = sphi %s1786_s25, %s2194_s25   ;;  %s1697_s24 = sphi %s1784_s24, %s2193_s24   ;;  %s1693_s23 = sphi %s1782_s23, %s2189_s23   ;;  %s1689_s22 = sphi %s1780_s22, %s2192_s22   ;;  %s1685_s21 = sphi %s1778_s21, %s2191_s21  }
   0xd   : > { %2166 = sst [smem:[#allocation15_spill]] %s1693_s23  ;;  %s1309_s28 = sadd.s32 4294967294, %s1705_s26  }
   0xe   : > { %s47_s29 = sadd.s32 1, %s1701_s25  ;;  %s108_s30 = sadd.s32 1, %s1693_s23 }
   0xf   : > { %p49_p0 = scmp.ge.s32.totalorder %s47_s29, 2  ;;  %p115_p1 = scmp.ne.s32.totalorder %s1693_s23, %s1689_s22 }
  0x10   : > { %p116_p2 = scmp.eq.s32.totalorder %s1705_s26, 0  ;;  %p121_p3 = scmp.ne.s32.totalorder %s1689_s22, %s1685_s21 }
  0x11   : > { %s2196_s29 = smov (%p49_p0, %s47_s29), 0  ;;  %p122_p5 = scmp.eq.s32.totalorder %s1308_s27, 0 }
  0x12   : > { %2167 = sst [smem:[#allocation16_spill]] %s2196_s29  ;;  %p1819_p4 = por %p116_p2, %p115_p1 }
  0x13   : > { %s105_s14 = ssub.s32 %s1701_s25, %s2196_s29  ;;  %p325_p6 = scmp.eq.s32.totalorder %s1308_s27, 1 }
  0x14   : > { %p106_p7 = scmp.eq.s32.totalorder %s105_s14, 0  ;;  %p1825_p8 = por %p122_p5, %p121_p3 }
  0x15   : > { %p1829_p9 = por %p325_p6, %p115_p1  ;;  %p331_p10 = scmp.eq.s32.totalorder %s1309_s28, 1 }
  0x16   : > { %s2169_s15 = scalar_select %p1825_p8, 1, 0 }
  0x17   : > { %s2170_s16 = scalar_select %p1829_p9, 1, 0 }
  0x18   : > { %s1834_s17 = scalar_select %p106_p7, %s1693_s23, %s108_s30  }
  0x19   : > { %p1836_p11 = por %p331_p10, %p121_p3  ;;  %p1457_p13 = scmp.lt.s32.totalorder %s1705_s26, 2 }
  0x1a   : > { %2171 = sst [smem:[#allocation17_spill]] %s1834_s17  ;;  %s1843_s19 = sand.u32 1, %s1693_s23  }
  0x1b   : > { %s2172_s18 = scalar_select %p1836_p11, 1, 0 }
  0x1c   : > { %s2159_s20 = sshll.u32 %s1701_s25, 4  ;;  %s419_s27 = scalar_lea.vmem [#allocation2], %s1843_s19 }
  0x1d   : > { %2173 = sst [smem:[#allocation18_spill]] %s2172_s18  ;;  %s426_s14 = sshll.u32 %s419_s27, 4  ;;  %s1854_s14 = int_to_ptr.vmem [resolvable:$true] %s426_s14 }
  0x1e   : > { %s2174_s2 = sld [smem:[#allocation19_spill]]  ;;  %p1858_p0 = pnand %p1457_p13, %p1819_p4 }
  0x1f   : > { %s417_s27 = scalar_lea.sflag [#allocation3], %s1843_s19 }
  0x20   : > { %p1529_p5 = pneg %p1858_p0 }
  0x24   : > { %s1852_s28 = scalar_lea.hbm %s2174_s2, %s2159_s20  ;;  %s1532_s13 = scalar_lea.hbm %s2174_s2, 32 }
  0x25   : > { %s1527_s17 = scalar_lea.hbm %s1852_s28, 16  ;;  %p1533_p4 = scmp.lt.u32.totalorder %s1852_s28, %s2174_s2 }
  0x26   : > { %p1528_p3 = scmp.ne.s32.totalorder %s1852_s28, %s1527_s17  ;;  %p1534_p10 = scmp.lt.u32.totalorder %s1532_s13, %s1527_s17 }
  0x27   : > { %p1536_p12 = scmp.lt.u32.totalorder %s1527_s17, %s1852_s28 }
  0x28   : > { %p1530_p6 = pnand %p1529_p5, %p1528_p3  ;;  %p1535_p13 = por %p1534_p10, %p1533_p4 }
  0x2a   : > { %p1531_p7 = pneg %p1530_p6  ;;  %p1537_p1 = por %p1536_p12, %p1535_p13 }
  0x2c   : > { %p1538_p2 = pnand %p1537_p1, %p1531_p7 }
  0x2e   : > { %1541 = shalt.err (!%p1538_p2)
}
  0x2f   : > { %s1542_s18 = scalar_lea.vmem %s1854_s14, 16  ;;  %s1707_s21 = smov [#allocation2]  }
  0x30   : > { %p1543_p3 = scmp.ne.s32.totalorder %s1854_s14, %s1542_s18  ;;  %s1547_s29 = sshll.u32 %s1707_s21, 4  ;;  %s1548_s29 = int_to_ptr.vmem [resolvable:$false] %s1547_s29 }
  0x31   : > { %s1549_s23 = scalar_lea.vmem %s1548_s29, 32  ;;  %p1550_p9 = scmp.lt.s32.totalorder %s1854_s14, %s1548_s29 }
  0x32   : > { %p1545_p6 = pnand %p1543_p3, %p1529_p5  ;;  %p1551_p4 = scmp.lt.s32.totalorder %s1549_s23, %s1542_s18 }
  0x34   : > { %p1546_p11 = pneg %p1545_p6  ;;  %p1552_p10 = por %p1551_p4, %p1550_p9 }
  0x36   : > { %p1553_p12 = pnand %p1552_p10, %p1546_p11 }
  0x38   : > { %1556 = shalt.err (!%p1553_p12)
}
  0x39   : > { %1446 = dma.hbm_to_vmem [thread:$0]  (!%p1858_p0), %s1852_s28, 16, %s1854_s14, %s417_s27  }
  0x3a   : > { %p2176_p1 = scmp.lt.s32.totalorder %s1705_s26, 3  ;;  %p2177_p2 = scmp.ge.s32.totalorder %s1705_s26, 1 }
  0x3b   : > { %s2179_s18 = sshll.u32 %s1701_s25, 4  ;;  %s444_s29 = scalar_lea.vmem [#allocation5], %s1843_s19 }
  0x3c   : > { %p1894_p7 = pnand %p2177_p2, %p2176_p1  ;;  %s1903_s21 = scalar_lea.hbm %s2148_s4, %s2179_s18 }
  0x3d   : > { %s451_s23 = sshll.u32 %s444_s29, 4  ;;  %s442_s14 = scalar_lea.sflag [#allocation6], %s1843_s19  ;;  %s452_s23 = int_to_ptr.vmem [resolvable:$true] %s451_s23 }
  0x3e   : > { %s2178_s17 = scalar_select %p1894_p7, 1, 0 }
  0x3f   : > { %s1557_s28 = scalar_lea.hbm %s1903_s21, 16  ;;  %s1562_s20 = scalar_lea.hbm %s2148_s4, 32 }
  0x40   : > { %p1558_p9 = scmp.ne.s32.totalorder %s1903_s21, %s1557_s28  ;;  %p1563_p3 = scmp.lt.u32.totalorder %s1903_s21, %s2148_s4 }
  0x41   : > { %p1564_p6 = scmp.lt.u32.totalorder %s1562_s20, %s1557_s28  ;;  %p1566_p10 = scmp.lt.u32.totalorder %s1557_s28, %s1903_s21 }
  0x42   : > { %p1560_p11 = pnand %p1558_p9, %p1529_p5 }
  0x43   : > { %p1565_p4 = por %p1564_p6, %p1563_p3 }
  0x44   : > { %p1561_p13 = pneg %p1560_p11 }
  0x45   : > { %p1567_p12 = por %p1566_p10, %p1565_p4 }
  0x47   : > { %p1568_p1 = pnand %p1567_p12, %p1561_p13 }
  0x49   : > { %1571 = shalt.err (!%p1568_p1)
}
  0x4a   : > { %s1572_s19 = scalar_lea.vmem %s452_s23, 16  ;;  %s1708_s29 = smov [#allocation5]  }
  0x4b   : > { %p1573_p2 = scmp.ne.s32.totalorder %s452_s23, %s1572_s19  ;;  %s1577_s2 = sshll.u32 %s1708_s29, 4  ;;  %s1578_s2 = int_to_ptr.vmem [resolvable:$false] %s1577_s2 }
  0x4c   : > { %s1579_s27 = scalar_lea.vmem %s1578_s2, 32  ;;  %p1580_p8 = scmp.lt.s32.totalorder %s452_s23, %s1578_s2 }
  0x4d   : > { %p1575_p9 = pnand %p1573_p2, %p1529_p5  ;;  %p1581_p7 = scmp.lt.s32.totalorder %s1579_s27, %s1572_s19 }
  0x4f   : > { %p1576_p11 = pneg %p1575_p9  ;;  %p1582_p3 = por %p1581_p7, %p1580_p8 }
  0x51   : > { %p1583_p6 = pnand %p1582_p3, %p1576_p11 }
  0x53   : > { %1586 = shalt.err (!%p1583_p6)
}
  0x54   : > { %1449 = dma.hbm_to_vmem [thread:$0]  (!%p1858_p0), %s1903_s21, 16, %s452_s23, %s442_s14  }
  0x55   : > { %p2180_p13 = scmp.ne.s32.totalorder %s2178_s17, 0 }
  0x56   : > { %s1929_s28 = sand.u32 (!%p2180_p13), 1, %s1689_s22   ;;  %p2181_p5 = scmp.ne.s32.totalorder (!%p2180_p13), %s2169_s15, 0 }
  0x57   : > { %460 = sbr.rel (%p2180_p13) target bundleno = 1743 (0x6cf), region = 64  ;;  %s463_s20 = scalar_lea.sflag (!%p2180_p13), [#allocation3], %s1929_s28 }
  0x58   : > { %s465_s18 = scalar_lea.vmem (!%p2180_p13), [#allocation2], %s1929_s28 }
  0x5e   : > { %1668 = dma.done.wait (%p2181_p5), %s463_s20, 16  }
  0x5f   : > { %1670 = vsyncadd (%p2181_p5), %s463_s20, 4294967280  ;;  %s471_s30 = scalar_lea.sflag [#allocation6], %s1929_s28 }
  0x60   : > { %1672 = dma.done.wait (%p2181_p5), %s471_s30, 16  }
  0x61   : > { %1674 = vsyncadd (%p2181_p5), %s471_s30, 4294967280  ;;  %p540_p8 = scmp.lt.s32.totalorder %s1697_s24, 1  ;;  %v1709_v0 = vmov 0.0   ;;  %vm1710_vm0 = vmmov 0   ;;  %vm575_vm1 = vcmask 1043456   ;;  %vm571_vm2 = vcmask 64512  }
  0x62   : > { %1373 = vmatprep.subr.bf16.mxu0 %v1709_v0  ;;  %1375 = vmatprep.mubr.msk.bf16.mxu0 %vm1710_vm0, %v1709_v0  ;;  %v565_v1 = vld [vmem:[%s2149_s5] sm:$0xf]  ;;  %v1511_v5 = vld [vmem:[%s2151_s7 + $0x8] sm:$0xff]   ;;  %vm653_vm3 = vcmask 261120   ;;  %s2182_s23 = scalar_lea.vmem [#allocation5], %s1929_s28  ;;  %vm875_vm4 = vcmask 97280  }
  0x63   : > { %s1948_s17 = scalar_select %p540_p8, %s1697_s24, 1  ;;  %1379 = vmatprep.subr.bf16.mxu1 %v1709_v0  ;;  %1383 = vmatprep.mubr.msk.bf16.mxu1 %vm1710_vm0, %v1709_v0  ;;  %v577_v2 = vsel %vm575_vm1, %v565_v1, 0  ;;  %v1510_v4 = vld [vmem:[%s2151_s7] sm:$0xff]   ;;  %v1514_v8 = vld [vmem:[%s2150_s6 + $0x8] sm:$0xff]   ;;  %vm903_vm5 = vcmask 1045504   ;;  %vm1103_vm6 = vcmask 130048  }
  0x64   : > { %1374 = vmatpush3.bf16.msra.mxu0 %v577_v2  ;;  %v1513_v7 = vld [vmem:[%s2150_s6] sm:$0xff]   ;;  %v1516_v33 = vld [vmem:[%s2152_s8 + $0x8] sm:$0xff]   ;;  %s1315_s2 = sshll.u32 %s1929_s28, 3  ;;  %s1112_s14 = scalar_lea.sflag [#allocation9], %s1929_s28 }
  0x65   : > { %s1349_s15 = sshll.u32 %s1948_s17, 3  ;;  %1387 = vmatprep.subr.bf16.mxu0 %v1709_v0  ;;  %1380 = vmatpush3.bf16.msra.mxu1 %v1513_v7  ;;  %s551_s27 = scalar_lea.vmem %s2145_s1, %s1948_s17  ;;  %v1324_v13 = vld [vmem:[%s465_s18] ss:$0 sm:$0xff]  ;;  %v1518_v60 = vld [vmem:[%s2153_s9 + $0x8] sm:$0xff]  }
  0x66   : > { %s547_s13 = scalar_lea.vmem %s2144_s0, %s1349_s15  ;;  %s556_s20 = scalar_lea.vmem %s2147_s3, %s1349_s15  ;;  %1381 = vmatprep.subr.bf16.mxu1 %v1709_v0  ;;  %v1323_v9 = vld [vmem:[%s551_s27] ss:$0 sm:$0xff] }
  0x67   : > { %v1509_v3 = vld [vmem:[%s547_s13] sm:$0xff]   ;;  %s538_s27 = scalar_lea.vmem [#allocation8], %s1315_s2  ;;  %s1345_s18 = sshll.u32 %s1697_s24, 7 }
  0x68   : > { %1376 = vmatmul.mubr.msk.bf16.vlgmr.msra.gmra.mrb[0].mxu0 %vm571_vm2, %v1509_v3  ;;  %v1512_v6 = vld [vmem:[%s556_s20] sm:$0x3f]   ;;  %s2067_s30 = scalar_lea.hbm %s2156_s12, %s1345_s18  ;;  %p2183_p7 = scmp.ne.s32.totalorder %s2170_s16, 0 }
  0x69   : > { %1388 = vmatpush3.bf16.msra.mxu0 %v1510_v4  ;;  %1391 = vmatprep.mubr.msk.bf16.mxu0 %vm1710_vm0, %v1709_v0  ;;  %v1515_v32 = vld [vmem:[%s2152_s8] sm:$0xff]   ;;  %s1711_s15 = smov [#allocation8]  }
  0x6a   : > { %1389 = vmatprep.subr.bf16.mxu0 %v1709_v0  ;;  %1382 = vmatpush3.bf16.msra.mxu1 %v1514_v8  ;;  %v1335_v34 = vld [vmem:[%s2182_s23] ss:$0 sm:$0xff]  ;;  %s1140_s23 = sshll.u32 %s538_s27, 4  ;;  %s1591_s13 = sshll.u32 %s1711_s15, 4  ;;  %s1141_s23 = int_to_ptr.vmem [resolvable:$true] %s1140_s23  ;;  %s1592_s13 = int_to_ptr.vmem [resolvable:$false] %s1591_s13 }
  0x6b   : > { %1395 = vmatprep.subr.bf16.mxu1 %v1709_v0  ;;  %v1517_v59 = vld [vmem:[%s2153_s9] sm:$0xff]   ;;  %s1587_s21 = scalar_lea.vmem %s1141_s23, 128  ;;  %s1593_s19 = scalar_lea.vmem %s1592_s13, 256 }
  0x6c   : > { %p1588_p0 = scmp.ne.s32.totalorder %s1141_s23, %s1587_s21  ;;  %p1594_p12 = scmp.lt.s32.totalorder %s1141_s23, %s1592_s13 }
  0x6d   : > { %1390 = vmatpush3.bf16.msra.mxu0 %v1511_v5  ;;  %p1595_p1 = scmp.lt.s32.totalorder %s1593_s19, %s1587_s21 }
  0x6e   : > { %1403 = vmatprep.subr.bf16.mxu0 %v1709_v0  ;;  %p1589_p4 = pnand %p1588_p0, %p2183_p7 }
  0x6f   : > { %p1596_p2 = por %p1595_p1, %p1594_p12 }
  0x70   : > { %1392 = vmatmul.mubr.msk.bf16.vlgmr.msra.gmra.mrb[4].mxu0 %vm653_vm3, %v1512_v6  ;;  %p1590_p10 = pneg %p1589_p4 }
  0x71   : > { %1405 = vmatprep.mubr.msk.bf16.mxu0 %vm1710_vm0, %v1709_v0 }
  0x72   : > { %p1597_p9 = pnand %p1596_p2, %p1590_p10 }
 0x13b   : > { %v613_v10 = vpop.f32.mrb[0].mxu0 }
 0x13c   : > { %v1989_v11 = vadd.f32 %v1323_v9, %v613_v10  ;;  %v1377_v12 = vpop.f32.mrb[1].mxu0 }
 0x13d   : > { %v616_v14 = vpop.f32.mrb[2].mxu0  ;;  %v1011_v12 = vld [vmem:[%s2154_s10] sm:$0xf] }
 0x13e   : > { %v1993_v15 = vadd.f32 %v1323_v9, %v616_v14  ;;  %v1378_v16 = vpop.f32.mrb[3].mxu0  ;;  %v1996_v17 = vadd.f32 %v1324_v13, %v1989_v11 }
 0x140   : > { %v1999_v18 = vadd.f32 %v1324_v13, %v1993_v15  ;;  %v1059_v19 = vpack.c.bf16 %v1993_v15, %v1989_v11 }
 0x142   : > { %v636_v20 = vpack.c.bf16 %v1999_v18, %v1996_v17  ;;  %v1061_v10 = vsel %vm653_vm3, %v1059_v19, 0 }
 0x143   : > { %v756_v21 = vpop.f32.mrb[4].mxu0 }
 0x144   : > { %1384 = vmatmul.mubr.msk.bf16.vlgmr.msra.gmra.mrb[0].mxu1 %vm653_vm3, %v636_v20  ;;  %v1393_v22 = vpop.f32.mrb[5].mxu0 }
 0x145   : > { %v759_v23 = vpop.f32.mrb[6].mxu0  ;;  %1399 = vmatprep.mubr.msk.bf16.mxu1 %vm1710_vm0, %v1709_v0  ;;  %1396 = vmatpush3.bf16.msra.mxu1 %v1515_v32 }
 0x146   : > { %v821_v24 = vpack.c.bf16 %v759_v23, %v756_v21  ;;  %v1394_v25 = vpop.f32.mrb[7].mxu0  ;;  %1397 = vmatprep.subr.bf16.mxu1 %v1709_v0 }
 0x148   : > { %v832_v26 = vsel %vm653_vm3, %v821_v24, 0 }
 0x149   : > { %1404 = vmatpush3.bf16.xpose.msra.mxu0 %v832_v26  ;;  %1398 = vmatpush3.bf16.msra.mxu1 %v1516_v33 }
 0x14a   : > { %1415 = vmatprep.subr.bf16.mxu0 %v1709_v0  ;;  %1409 = vmatprep.subr.bf16.mxu1 %v1709_v0 }
 0x14c   : > { %1400 = vmatmul.mubr.msk.bf16.vlgmr.msra.gmra.mrb[4].mxu1 %vm653_vm3, %v1512_v6 }
 0x14d   : > { %1411 = vmatprep.mubr.msk.bf16.mxu1 %vm1710_vm0, %v1709_v0 }
 0x217   : > { %v691_v27 = vpop.f32.mrb[0].mxu1 }
 0x218   : > { %v1385_v28 = vpop.f32.mrb[1].mxu1 }
 0x219   : > { %v694_v29 = vpop.f32.mrb[2].mxu1 }
 0x21a   : > { %v820_v30 = vpack.c.bf16 %v694_v29, %v691_v27  ;;  %v1386_v31 = vpop.f32.mrb[3].mxu1 }
 0x21c   : > { %1406 = vmatmul.mubr.msk.bf16.vlgmr.msra.gmra.mrb[8].mxu0 %vm653_vm3, %v820_v30 }
 0x21d   : > { %1419 = vmatprep.mubr.msk.bf16.mxu0 %vm1710_vm0, %v1709_v0  ;;  %1416 = vmatpush3.bf16.msra.mxu0 %v1517_v59 }
 0x21e   : > { %1417 = vmatprep.subr.bf16.mxu0 %v1709_v0 }
 0x21f   : > { %v813_v53 = vpop.f32.mrb[4].mxu1 }
 0x220   : > { %v1401_v54 = vpop.f32.mrb[5].mxu1 }
 0x221   : > { %v816_v55 = vpop.f32.mrb[6].mxu1  ;;  %1418 = vmatpush3.bf16.msra.mxu0 %v1518_v60 }
 0x222   : > { %v1402_v56 = vpop.f32.mrb[7].mxu1  ;;  %v899_v57 = vpack.c.bf16 %v816_v55, %v813_v53  ;;  %1429 = vmatprep.subr.bf16.mxu0 %v1709_v0 }
 0x224   : > { %v905_v58 = vsel %vm903_vm5, %v899_v57, 0 }
 0x225   : > { %1410 = vmatpush3.bf16.msra.mxu1 %v905_v58 }
 0x226   : > { %1423 = vmatprep.subr.bf16.mxu1 %v1709_v0 }
 0x2ef   : > { %v868_v35 = vpop.f32.mrb[8].mxu0 }
 0x2f0   : > { %v869_v36 = vadd.f32 %v1335_v34, %v868_v35  ;;  %v1407_v37 = vpop.f32.mrb[9].mxu0 }
 0x2f1   : > { %v871_v38 = vpop.f32.mrb[10].mxu0 }
 0x2f2   : > { %v872_v39 = vadd.f32 %v1335_v34, %v871_v38  ;;  %v1408_v40 = vpop.f32.mrb[11].mxu0  ;;  %v876_v41 = vsel %vm875_vm4, %v869_v36, -inf }
 0x2f3   : > { %877 = vmax.xlane.f32.xlu0 %v876_v41 }
 0x2f4   : > { %v879_v42 = vsel %vm875_vm4, %v872_v39, -inf }
 0x2f7   : > { %880 = vmax.xlane.f32.xlu0 %v879_v42 }
 0x380   : > { %v878_v43 = vpop.xlane.xlu0 %877 }
 0x381   : > { %v882_v44 = vsub.f32 %v869_v36, %v878_v43 }
 0x383   : > { %v884_v45 = vmul.f32 1.442695, %v882_v44 }
 0x384   : > { %v881_v46 = vpop.xlane.xlu0 %880 }
 0x385   : > { %1519 = vpow2.f32 %v884_v45  ;;  %v883_v47 = vsub.f32 %v872_v39, %v881_v46 }
 0x387   : > { %v886_v48 = vmul.f32 1.442695, %v883_v47 }
 0x389   : > { %1521 = vpow2.f32 %v886_v48 }
 0x38f   : > { %v1520_v49 = vpop.eup %1519 }
 0x390   : > { %v888_v50 = vsel %vm875_vm4, %v1520_v49, 0.0 }
 0x391   : > { %889 = vadd.xlane.f32.xlu1 %v888_v50 }
 0x393   : > { %v1522_v51 = vpop.eup %1521 }
 0x394   : > { %v891_v52 = vsel %vm875_vm4, %v1522_v51, 0.0 }
 0x395   : > { %892 = vadd.xlane.f32.xlu1 %v891_v52 }
 0x41e   : > { %v890_v61 = vpop.xlane.xlu1 %889 }
 0x41f   : > { %1523 = vrcp.f32 %v890_v61 }
 0x422   : > { %v893_v62 = vpop.xlane.xlu1 %892 }
 0x423   : > { %1525 = vrcp.f32 %v893_v62 }
 0x429   : > { %v1524_v63 = vpop.eup %1523 }
 0x42a   : > { %v896_v2 = vmul.f32 %v1524_v63, %v1520_v49 }
 0x42d   : > { %v1526_v1 = vpop.eup %1525 }
 0x42e   : > { %v897_v3 = vmul.f32 %v1526_v1, %v1522_v51 }
 0x430   : > { %v898_v4 = vpack.c.bf16 %v897_v3, %v896_v2 }
 0x432   : > { %1412 = vmatmul.mubr.msk.bf16.vlgmr.msra.gmra.mrb[8].mxu1 %vm875_vm4, %v898_v4 }
 0x433   : > { %1425 = vmatprep.mubr.msk.bf16.mxu1 %vm1710_vm0, %v1709_v0 }
 0x505   : > { %v941_v5 = vpop.f32.mrb[8].mxu1 }
 0x506   : > { %v1413_v6 = vpop.f32.mrb[9].mxu1 }
 0x507   : > { %v944_v7 = vpop.f32.mrb[10].mxu1 }
 0x508   : > { %v948_v8 = vpack.c.bf16 %v944_v7, %v941_v5  ;;  %v1414_v9 = vpop.f32.mrb[11].mxu1 }
 0x50a   : > { %1420 = vmatmul.mubr.msk.bf16.vlgmr.msra.gmra.mrb[12].mxu0 %vm653_vm3, %v948_v8 }
 0x50b   : > { %1430 = vmatpush3.bf16.xpose.msra.mxu0 %v1061_v10  ;;  %1431 = vmatprep.mubr.msk.bf16.mxu0 %vm1710_vm0, %v1709_v0 }
 0x512   : > { %1432 = vmatmul.mubr.msk.bf16.vlgmr.msra.gmra.mrb[16].mxu0 %vm653_vm3, %v1011_v12 }
 0x5dd   : > { %v1002_v13 = vpop.f32.mrb[12].mxu0 }
 0x5de   : > { %v1421_v14 = vpop.f32.mrb[13].mxu0  ;;  %v1009_v11 = vadd.f32 %v1002_v13, %v1996_v17 }
 0x5df   : > { %v1005_v16 = vpop.f32.mrb[14].mxu0 }
 0x5e0   : > { %v1010_v15 = vadd.f32 %v1005_v16, %v1999_v18  ;;  %v1422_v19 = vpop.f32.mrb[15].mxu0 }
 0x5e2   : > { %v1012_v20 = vpack.c.bf16 %v1010_v15, %v1009_v11 }
 0x5e4   : > { %v1017_v0 = vsel %vm653_vm3, %v1012_v20, 0 }
 0x5e5   : > { %1424 = vmatpush3.bf16.xpose.msra.mxu1 %v1017_v0  ;;  %v1097_v21 = vpop.f32.mrb[16].mxu0 }
 0x5e6   : > { %1105 = vst.msk [vmem:[%s538_s27] sm:$0xff] %vm1103_vm6, %v1097_v21  ;;  %v1433_v17 = vpop.f32.mrb[17].mxu0 }
 0x5e7   : > { %v1100_v22 = vpop.f32.mrb[18].mxu0 }
 0x5e8   : > { %v1434_v23 = vpop.f32.mrb[19].mxu0 }
 0x5ec   : > { %1426 = vmatmul.mubr.msk.bf16.vlgmr.msra.gmra.mrb[12].mxu1 %vm653_vm3, %v1011_v12 }
 0x5ed   : > { %1600 = shalt.err (!%p1597_p9)
}
 0x5ee   : > { %s1601_s29 = scalar_lea.hbm %s2067_s30, 128  ;;  %s1605_s20 = scalar_lea.hbm %s2156_s12, 256 }
 0x5ef   : > { %p1602_p11 = scmp.ne.s32.totalorder %s2067_s30, %s1601_s29  ;;  %p1606_p13 = scmp.lt.u32.totalorder %s2067_s30, %s2156_s12 }
 0x5f0   : > { %p1607_p5 = scmp.lt.u32.totalorder %s1605_s20, %s1601_s29  ;;  %p1609_p0 = scmp.lt.u32.totalorder %s1601_s29, %s2067_s30 }
 0x5f1   : > { %p1603_p3 = pnand %p1602_p11, %p2183_p7 }
 0x5f2   : > { %p1608_p8 = por %p1607_p5, %p1606_p13 }
 0x5f3   : > { %p1604_p6 = pneg %p1603_p3 }
 0x5f4   : > { %p1610_p4 = por %p1609_p0, %p1608_p8 }
 0x5f6   : > { %p1611_p10 = pnand %p1610_p4, %p1604_p6 }
 0x5f8   : > { %1614 = shalt.err (!%p1611_p10)
}
 0x5f9   : > { %1440 = dma.vmem_to_hbm [thread:$0]  (%p2183_p7), %s1141_s23, 128, %s2067_s30, %s1112_s14  }
 0x5fa   : > { %s531_s21 = scalar_lea.vmem [#allocation7], %s1315_s2  ;;  %s2094_s20 = scalar_lea.hbm %s2155_s11, %s1345_s18 }
 0x5fb   : > { %s1126_s19 = sshll.u32 %s531_s21, 4  ;;  %s1107_s30 = scalar_lea.sflag [#allocation4], %s1929_s28  ;;  %s2096_s19 = int_to_ptr.vmem [resolvable:$true] %s1126_s19 }
 0x5fc   : > { %s1615_s23 = scalar_lea.vmem %s2096_s19, 128  ;;  %s1712_s24 = smov [#allocation7]  }
 0x5fd   : > { %p1616_p12 = scmp.ne.s32.totalorder %s2096_s19, %s1615_s23  ;;  %s1619_s2 = sshll.u32 %s1712_s24, 4  ;;  %s1620_s2 = int_to_ptr.vmem [resolvable:$false] %s1619_s2 }
 0x5fe   : > { %s1621_s18 = scalar_lea.vmem %s1620_s2, 256  ;;  %p1622_p9 = scmp.lt.s32.totalorder %s2096_s19, %s1620_s2 }
 0x5ff   : > { %p1617_p1 = pnand %p1616_p12, %p2183_p7  ;;  %p1623_p11 = scmp.lt.s32.totalorder %s1621_s18, %s1615_s23 }
 0x601   : > { %p1618_p2 = pneg %p1617_p1  ;;  %p1624_p3 = por %p1623_p11, %p1622_p9 }
 0x603   : > { %p1625_p6 = pnand %p1624_p3, %p1618_p2 }
 0x6bf   : > { %v1053_v18 = vpop.f32.mrb[12].mxu1 }
 0x6c0   : > { %1104 = vst.msk [vmem:[%s531_s21] sm:$0xff] %vm1103_vm6, %v1053_v18  ;;  %v1427_v24 = vpop.f32.mrb[13].mxu1 }
 0x6c1   : > { %v1056_v25 = vpop.f32.mrb[14].mxu1 }
 0x6c2   : > { %1628 = shalt.err (!%p1625_p6)
}
 0x6c3   : > { %s1629_s28 = scalar_lea.hbm %s2094_s20, 128  ;;  %s1633_s15 = scalar_lea.hbm %s2155_s11, 256 }
 0x6c4   : > { %p1630_p13 = scmp.ne.s32.totalorder %s2094_s20, %s1629_s28  ;;  %p1634_p0 = scmp.lt.u32.totalorder %s2094_s20, %s2155_s11 }
 0x6c5   : > { %p1635_p4 = scmp.lt.u32.totalorder %s1633_s15, %s1629_s28  ;;  %p1637_p12 = scmp.lt.u32.totalorder %s1629_s28, %s2094_s20 }
 0x6c6   : > { %p1631_p5 = pnand %p1630_p13, %p2183_p7 }
 0x6c7   : > { %p1636_p10 = por %p1635_p4, %p1634_p0 }
 0x6c8   : > { %p1632_p8 = pneg %p1631_p5 }
 0x6c9   : > { %p1638_p1 = por %p1637_p12, %p1636_p10 }
 0x6cb   : > { %p1639_p2 = pnand %p1638_p1, %p1632_p8 }
 0x6cd   : > { %1642 = shalt.err (!%p1639_p2)
}
 0x6ce   : > { %1439 = dma.vmem_to_hbm [thread:$0]  (%p2183_p7), %s2096_s19, 128, %s2094_s20, %s1107_s30   ;;  %v1428_v26 = vpop.f32.mrb[15].mxu1 }
 0x6cf PF: > { %s2184_s27 = sld [smem:[#allocation14_spill]]  ;;  %s2185_s17 = sld [smem:[#allocation18_spill]] }
 0x6d0   : > { %p2187_p11 = scmp.ge.s32.totalorder %s1705_s26, 2 }
 0x6d5   : > { %s1152_s23 = sand.u32 1, %s2184_s27   ;;  %p2186_p9 = scmp.ne.s32.totalorder %s2185_s17, 0 }
 0x6d6   : > { %s1153_s24 = scalar_lea.sflag [#allocation4], %s1152_s23 }
 0x6d7   : > { %p1451_p3 = pnand %p2187_p11, %p2186_p9 }
 0x6d9   : > { %1676 = dma.done.wait (!%p1451_p3), %s1153_s24, 128  }
 0x6da   : > { %1678 = vsyncadd (!%p1451_p3), %s1153_s24, 4294967168  ;;  %s1162_s2 = scalar_lea.sflag [#allocation9], %s1152_s23 }
 0x6db   : > { %1680 = dma.done.wait (!%p1451_p3), %s1162_s2, 128  }
 0x6dc   : > { %1682 = vsyncadd (!%p1451_p3), %s1162_s2, 4294967168  ;;  %s35_s26 = sadd.s32 1, %s1705_s26   ;;  %s2188_s16 = sld [smem:[#allocation15_spill]] }
 0x6dd   : > { %p32_p6 = scmp.ge.s32.totalorder %s35_s26, 4   ;;  %s2189_s23 = sld [smem:[#allocation17_spill]] }
 0x6de   : > { %s2190_s19 = sld [smem:[#allocation16_spill]]  ;;  %s2191_s21 = smov %s1689_s22 }
 0x6df   : > { %s2193_s24 = smov %s1701_s25  ;;  %34 = sbr.rel (!%p32_p6) target bundleno = 12 (0xc), region = 148 }
 0x6e2   : > { %s2192_s22 = smov %s2188_s16 }
 0x6e4   : > { %s2194_s25 = smov %s2190_s19 }
 0x6e6   :  { %1167 = vsyncpa [#allocation3], 1 }
 0x6e7   :  { %1169 = vsyncpa [#allocation3 + $0x1], 1 }
 0x6e8   :  { %1170 = vsyncpa [#allocation6], 1 }
 0x6e9   :  { %1172 = vsyncpa [#allocation6 + $0x1], 1 }
 0x6ea   :  { %1173 = vsyncpa [#allocation4], 1 }
 0x6eb   :  { %1175 = vsyncpa [#allocation4 + $0x1], 1 }
 0x6ec   :  { %1176 = vsyncpa [#allocation9], 1 }
 0x6ed   :  { %1178 = vsyncpa [#allocation9 + $0x1], 1 }

</bundles_post_ra>
